<compile_context>
chip_gen: v7x
topology: tpu7x:2x2x1
jax: 0.10.0
libtpu: 0.0.40
codegen_flags: <defaults>
</compile_context>

<pallas_src>
import math
from functools import partial

import jax
import jax.numpy as jnp
from jax.experimental import pallas as pl
from jax.experimental.pallas import tpu as pltpu


def _fused_block_kernel(patches_ref, w_ref, gamma_ref, beta_ref, o_ref,
                        conv_sc, stats_sc, ss_sc, *, B_t, NB, inv_count, eps):
    """Two-phase fused Conv -> BN(train stats) -> ReLU.

    patches_ref : (B_t, KC, HW) bf16   im2col patches of B_t images (lane-dense HW)
    w_ref       : (Cout, KC)    bf16   im2col-flattened conv weights (resident)
    gamma_ref   : (Cout, 1)     f32    BN affine weight
    beta_ref    : (Cout, 1)     f32    BN affine bias
    o_ref       : (B_t, Cout, HW) f32  final output block (phase 1 only)
    conv_sc     : (N, Cout, HW) f32    persistent VMEM conv activation
    stats_sc    : (2, Cout, 1)  f32    running [sum, sum_sq] per channel
    ss_sc       : (2, Cout, 1)  f32    finalized [scale, shift]
    """
    p = pl.program_id(0)                 # 0 = conv + stats, 1 = BN affine + ReLU
    n = pl.program_id(1)                 # batch tile
    start = pl.multiple_of(n * B_t, B_t)

    @pl.when(p == 0)
    def _conv_and_stats():
        @pl.when(n == 0)
        def _init():
            stats_sc[...] = jnp.zeros_like(stats_sc)

        wmat = w_ref[...]                                   # hoist; resident (Cout, KC)
        s = jnp.zeros(stats_sc.shape[1:], jnp.float32)      # (Cout, 1)
        q = jnp.zeros(stats_sc.shape[1:], jnp.float32)
        for b in range(B_t):                                # static unroll, B_t small
            # (Cout, KC) x (KC, HW) -> (Cout, HW): one MXU matmul, f32 accumulation.
            acc = jnp.dot(wmat, patches_ref[b],
                          preferred_element_type=jnp.float32)
            conv_sc[start + b] = acc                        # persistent VMEM activation
            s = s + jnp.sum(acc, axis=1, keepdims=True)     # lane reduce -> (Cout, 1)
            q = q + jnp.sum(acc * acc, axis=1, keepdims=True)
        stats_sc[0] = stats_sc[0] + s
        stats_sc[1] = stats_sc[1] + q

        @pl.when(n == NB - 1)
        def _finalize():                                    # in-kernel BN finalize
            mean = stats_sc[0] * inv_count                  # (Cout, 1)
            var = jnp.maximum(stats_sc[1] * inv_count - mean * mean, 0.0)
            inv = jax.lax.rsqrt(var + eps)
            scale = gamma_ref[...] * inv
            ss_sc[0] = scale
            ss_sc[1] = beta_ref[...] - mean * scale

    @pl.when(p == 1)
    def _bn_relu():
        v = conv_sc[pl.ds(start, B_t)]                      # (B_t, Cout, HW) f32
        o_ref[...] = jnp.maximum(v * ss_sc[0] + ss_sc[1], 0.0)


@jax.jit
def block_forward(x_nchw, w, b, gamma, beta):
    """Conv2d(k, padding=k//2, bias) -> BatchNorm2d (train-mode stats) -> ReLU.

    x_nchw : (N, Cin, H, W) f32
    w      : (KH, KW, Cin, Cout)   (PyTorch weight[co, ci, kh, kw] == w[kh, kw, ci, co])
    b      : (Cout,) conv bias  -- mathematically dead under training-mode BN (a
             per-channel constant shifts the mean by exactly b and leaves the variance
             unchanged), so it is intentionally unused.
    gamma, beta : (Cout,) BatchNorm affine parameters
    returns: (N, Cout, H, W) f32 (NCHW)
    """
    del b  # exact cancellation under train-mode BatchNorm; see docstring.

    N, Cin, H, W = x_nchw.shape
    KH, KW, _, Cout = w.shape
    # The PyTorch module derives BOTH paddings from kernel_size[0]; a 'same'-shaped
    # output therefore requires a square kernel.
    assert KH == KW, "Block uses padding=(k[0]//2, k[0]//2); square kernels only"
    ph = pw = KH // 2
    HW = H * W
    KC = KH * KW * Cin

    # ---- wrapper-side im2col (one-time XLA layout transform, keeps the kernel free of
    #      tile-crossing slice/reshape relayouts).  Channel order: (kh, kw, ci). -------
    x_pad = jnp.pad(x_nchw, ((0, 0), (0, 0), (ph, ph), (pw, pw)))
    cols = [x_pad[:, :, kh:kh + H, kw:kw + W].reshape(N, Cin, HW)
            for kh in range(KH) for kw in range(KW)]
    patches = jnp.concatenate(cols, axis=1).astype(jnp.bfloat16)     # (N, KC, HW)

    # Matching weight layout: w.reshape flattens (kh, kw, ci) in the same order.
    w2d = jnp.transpose(w.reshape(KC, Cout)).astype(jnp.bfloat16)    # (Cout, KC)
    gamma_c = gamma.reshape(Cout, 1).astype(jnp.float32)
    beta_c = beta.reshape(Cout, 1).astype(jnp.float32)

    # ---- images per grid step: largest divisor of N with <= ~2 MiB of bf16 patches. --
    per_img_bytes = KC * HW * 2
    step_budget = 2 * (1 << 20)
    B_t = 1
    for d in range(1, N + 1):
        if N % d == 0 and d * per_img_bytes <= step_budget:
            B_t = d
    NB = N // B_t

    # ---- VMEM plan (persistent activation + double-buffered blocks), per-gen safe. ---
    conv_sc_bytes = N * Cout * HW * 4
    vmem_need = (conv_sc_bytes
                 + 2 * (B_t * KC * HW * 2)       # double-buffered patch blocks
                 + 2 * (B_t * Cout * HW * 4)     # double-buffered output blocks
                 + Cout * KC * 2 + 4 * Cout * 4  # weights + gamma/beta
                 + (64 << 10))                   # small scratches / slack
    # Conservative budget valid on v7x (32 MiB scoped / 64 MiB physical) and v5e/v6e.
    assert vmem_need <= 28 * (1 << 20), (
        "TODO(synk): fall back to an HBM-resident activation buffer "
        "(memory_space=pl.ANY + pltpu.make_async_copy) when the persistent conv "
        "scratch does not fit the scoped-VMEM budget")
    vmem_limit = int(min(max(2 * vmem_need, 16 << 20), 48 << 20))

    kernel = partial(_fused_block_kernel, B_t=B_t, NB=NB,
                     inv_count=1.0 / float(N * HW), eps=1e-5)

    out_flat = pl.pallas_call(
        kernel,
        grid=(2, NB),                           # (phase, batch-tile); batch is fastest
        in_specs=[
            # Phase 0 walks the batch tiles; phase 1 parks on the last tile (no re-DMA).
            pl.BlockSpec((B_t, KC, HW),
                         lambda p, n: (n * (1 - p) + (NB - 1) * p, 0, 0)),
            pl.BlockSpec((Cout, KC), lambda p, n: (0, 0)),
            pl.BlockSpec((Cout, 1), lambda p, n: (0, 0)),
            pl.BlockSpec((Cout, 1), lambda p, n: (0, 0)),
        ],
        # Output parks on block 0 during phase 0 (never written back there) and walks
        # the batch tiles in phase 1 -> each block is written back exactly once.
        out_specs=pl.BlockSpec((B_t, Cout, HW), lambda p, n: (n * p, 0, 0)),
        out_shape=jax.ShapeDtypeStruct((N, Cout, HW), jnp.float32),
        scratch_shapes=[
            pltpu.VMEM((N, Cout, HW), jnp.float32),   # persistent conv activation
            pltpu.VMEM((2, Cout, 1), jnp.float32),    # [sum, sum_sq] accumulator
            pltpu.VMEM((2, Cout, 1), jnp.float32),    # [scale, shift]
        ],
        compiler_params=pltpu.CompilerParams(
            # Both axes carry sequential dependencies (phase order, stats accumulation,
            # persistent activation scratch) -> "arbitrary".
            # TODO(synk): for v7x dual-TC, split the batch axis CORE_PARALLEL and add a
            # per-core partial-stats combine step.
            dimension_semantics=("arbitrary", "arbitrary"),
            vmem_limit_bytes=vmem_limit),
    )(patches, w2d, gamma_c, beta_c)

    return out_flat.reshape(N, Cout, H, W)      # NCHW, free reshape


if __name__ == "__main__":
    # Small shapes consistent with the module: batch=2, dim_in=4, dim_out=8, 16x16, k=3.
    N, Cin, Cout, H, W, K = 2, 4, 8, 16, 16, 3

    key = jax.random.PRNGKey(0)
    kx, kw, kb = jax.random.split(key, 3)

    x = jax.random.normal(kx, (N, Cin, H, W), dtype=jnp.float32)

    # Deterministic Conv2d-style init (kaiming-uniform bound = 1/sqrt(fan_in)).
    fan_in = Cin * K * K
    bound = 1.0 / math.sqrt(fan_in)
    w = jax.random.uniform(kw, (K, K, Cin, Cout),
                           minval=-bound, maxval=bound, dtype=jnp.float32)
    b = jax.random.uniform(kb, (Cout,),
                           minval=-bound, maxval=bound, dtype=jnp.float32)
    # BatchNorm2d affine params at PyTorch init: weight=1, bias=0.
    gamma = jnp.ones((Cout,), jnp.float32)
    beta = jnp.zeros((Cout,), jnp.float32)

    out = block_forward(x, w, b, gamma, beta)
    jax.block_until_ready(out)
    assert out.shape == (N, Cout, H, W)

    # Sanity check against a plain-JAX reference (includes the conv bias -> also
    # validates that the bias cancels exactly under training-mode BN).  bf16 matmul
    # operands with f32 accumulation -> loose tolerance.
    w_oihw = jnp.transpose(w, (3, 2, 0, 1))                    # (Cout, Cin, KH, KW)
    conv_ref = jax.lax.conv_general_dilated(
        x, w_oihw, window_strides=(1, 1),
        padding=((K // 2, K // 2), (K // 2, K // 2)),
        dimension_numbers=("NCHW", "OIHW", "NCHW")) + b.reshape(1, Cout, 1, 1)
    mean_r = conv_ref.mean(axis=(0, 2, 3), keepdims=True)
    var_r = conv_ref.var(axis=(0, 2, 3), keepdims=True)
    ref = jnp.maximum((conv_ref - mean_r) * jax.lax.rsqrt(var_r + 1e-5) * 1.0 + 0.0, 0.0)
    err = float(jnp.max(jnp.abs(out - ref)))
    assert err < 1e-1, f"max abs error vs reference: {err}"

    print("KERNEL_OK")
</pallas_src>

<mosaic_0001>
module attributes {stable_mosaic.version = 11 : i64} {
  func.func @_fused_block_kernel(%arg0: i32, %arg1: i32, %arg2: memref<2x36x256xbf16, #tpu.memory_space<vmem>>, %arg3: memref<8x36xbf16, #tpu.memory_space<vmem>>, %arg4: memref<8x1xf32, #tpu.memory_space<vmem>>, %arg5: memref<8x1xf32, #tpu.memory_space<vmem>>, %arg6: memref<2x8x256xf32, #tpu.memory_space<vmem>>, %arg7: memref<2x8x256xf32, #tpu.memory_space<vmem>>, %arg8: memref<2x8x1xf32, #tpu.memory_space<vmem>>, %arg9: memref<2x8x1xf32, #tpu.memory_space<vmem>>) attributes {dimension_semantics = [#tpu.dimension_semantics<arbitrary>, #tpu.dimension_semantics<arbitrary>], iteration_bounds = array<i64: 2, 1>, scalar_prefetch = 0 : i64, scratch_operands = 3 : i64, tpu.core_type = #tpu.core_type<tc>, window_params = [{transform_indices = @transform_0, window_bounds = array<i64: 2, 36, 256>}, {pipeline_mode = #tpu.pipeline_mode<synchronous>, transform_indices = @transform_1, window_bounds = array<i64: 8, 36>}, {pipeline_mode = #tpu.pipeline_mode<synchronous>, transform_indices = @transform_2, window_bounds = array<i64: 8, 1>}, {pipeline_mode = #tpu.pipeline_mode<synchronous>, transform_indices = @transform_3, window_bounds = array<i64: 8, 1>}, {transform_indices = @transform_4, window_bounds = array<i64: 2, 8, 256>}]} {
    %c2_i32 = arith.constant 2 : i32
    %0 = arith.muli %arg1, %c2_i32 : i32
    %1 = tpu.assume_multiple %0, 2 : i32
    %c0_i32 = arith.constant 0 : i32
    %2 = arith.cmpi eq, %arg0, %c0_i32 : i32
    %3 = arith.extui %2 : i1 to i32
    %c0_i32_0 = arith.constant 0 : i32
    %4 = arith.cmpi ne, %3, %c0_i32_0 : i32
    scf.if %4 {
      %c0_i32_2 = arith.constant 0 : i32
      %8 = arith.cmpi eq, %arg1, %c0_i32_2 : i32
      %9 = arith.extui %8 : i1 to i32
      %c0_i32_3 = arith.constant 0 : i32
      %10 = arith.cmpi ne, %9, %c0_i32_3 : i32
      scf.if %10 {
        %cst_37 = arith.constant 0.000000e+00 : f32
        %59 = vector.broadcast %cst_37 : f32 to vector<2x8x1xf32>
        %c0_38 = arith.constant 0 : index
        %c0_39 = arith.constant 0 : index
        %c0_40 = arith.constant 0 : index
        %60 = vector.load %arg8[%c0_38, %c0_39, %c0_40] : memref<2x8x1xf32, #tpu.memory_space<vmem>>, vector<2x8x1xf32>
        tpu.vector_store %arg8[%c0_38, %c0_39, %c0_40], %59 {strides = array<i32>} : memref<2x8x1xf32, #tpu.memory_space<vmem>>, vector<2x8x1xf32>,
      } else {
      }
      %c0 = arith.constant 0 : index
      %c0_4 = arith.constant 0 : index
      %11 = vector.load %arg3[%c0, %c0_4] : memref<8x36xbf16, #tpu.memory_space<vmem>>, vector<8x36xbf16>
      %cst = arith.constant 0.000000e+00 : f32
      %12 = vector.broadcast %cst : f32 to vector<8x1xf32>
      %cst_5 = arith.constant 0.000000e+00 : f32
      %13 = vector.broadcast %cst_5 : f32 to vector<8x1xf32>
      %c0_6 = arith.constant 0 : index
      %c0_7 = arith.constant 0 : index
      %c0_8 = arith.constant 0 : index
      %14 = vector.load %arg2[%c0_6, %c0_7, %c0_8] : memref<2x36x256xbf16, #tpu.memory_space<vmem>>, vector<1x36x256xbf16>
      %15 = vector.shape_cast %14 : vector<1x36x256xbf16> to vector<36x256xbf16>
      %cst_9 = arith.constant dense<0.000000e+00> : vector<8x256xf32>
      %16 = tpu.matmul %11, %15, %cst_9 {dimension_numbers = #tpu.dot_dimension_numbers<[1], [0], [0], [1], [0, 0, 1, 1], [], []>} : vector<8x36xbf16>, vector<36x256xbf16>, vector<8x256xf32> -> vector<8x256xf32>
      %c0_i32_10 = arith.constant 0 : i32
      %17 = arith.addi %1, %c0_i32_10 : i32
      %18 = arith.index_cast %17 : i32 to index
      %c0_11 = arith.constant 0 : index
      %c0_12 = arith.constant 0 : index
      %19 = vector.load %arg7[%18, %c0_11, %c0_12] : memref<2x8x256xf32, #tpu.memory_space<vmem>>, vector<1x8x256xf32>
      %20 = vector.shape_cast %19 : vector<1x8x256xf32> to vector<8x256xf32>
      %21 = vector.shape_cast %16 : vector<8x256xf32> to vector<1x8x256xf32>
      tpu.vector_store %arg7[%18, %c0_11, %c0_12], %21 {strides = array<i32>} : memref<2x8x256xf32, #tpu.memory_space<vmem>>, vector<1x8x256xf32>,
      %cst_13 = arith.constant dense<0.000000e+00> : vector<8xf32>
      %22 = vector.multi_reduction <add>, %16, %cst_13 [1] : vector<8x256xf32> to vector<8xf32>
      %23 = vector.shape_cast %22 : vector<8xf32> to vector<8x1xf32>
      %24 = arith.addf %12, %23 : vector<8x1xf32>
      %25 = arith.mulf %16, %16 : vector<8x256xf32>
      %cst_14 = arith.constant dense<0.000000e+00> : vector<8xf32>
      %26 = vector.multi_reduction <add>, %25, %cst_14 [1] : vector<8x256xf32> to vector<8xf32>
      %27 = vector.shape_cast %26 : vector<8xf32> to vector<8x1xf32>
      %28 = arith.addf %13, %27 : vector<8x1xf32>
      %c1 = arith.constant 1 : index
      %c0_15 = arith.constant 0 : index
      %c0_16 = arith.constant 0 : index
      %29 = vector.load %arg2[%c1, %c0_15, %c0_16] : memref<2x36x256xbf16, #tpu.memory_space<vmem>>, vector<1x36x256xbf16>
      %30 = vector.shape_cast %29 : vector<1x36x256xbf16> to vector<36x256xbf16>
      %cst_17 = arith.constant dense<0.000000e+00> : vector<8x256xf32>
      %31 = tpu.matmul %11, %30, %cst_17 {dimension_numbers = #tpu.dot_dimension_numbers<[1], [0], [0], [1], [0, 0, 1, 1], [], []>} : vector<8x36xbf16>, vector<36x256xbf16>, vector<8x256xf32> -> vector<8x256xf32>
      %c1_i32_18 = arith.constant 1 : i32
      %32 = arith.addi %1, %c1_i32_18 : i32
      %33 = arith.index_cast %32 : i32 to index
      %c0_19 = arith.constant 0 : index
      %c0_20 = arith.constant 0 : index
      %34 = vector.load %arg7[%33, %c0_19, %c0_20] : memref<2x8x256xf32, #tpu.memory_space<vmem>>, vector<1x8x256xf32>
      %35 = vector.shape_cast %34 : vector<1x8x256xf32> to vector<8x256xf32>
      %36 = vector.shape_cast %31 : vector<8x256xf32> to vector<1x8x256xf32>
      tpu.vector_store %arg7[%33, %c0_19, %c0_20], %36 {strides = array<i32>} : memref<2x8x256xf32, #tpu.memory_space<vmem>>, vector<1x8x256xf32>,
      %cst_21 = arith.constant dense<0.000000e+00> : vector<8xf32>
      %37 = vector.multi_reduction <add>, %31, %cst_21 [1] : vector<8x256xf32> to vector<8xf32>
      %38 = vector.shape_cast %37 : vector<8xf32> to vector<8x1xf32>
      %39 = arith.addf %24, %38 : vector<8x1xf32>
      %40 = arith.mulf %31, %31 : vector<8x256xf32>
      %cst_22 = arith.constant dense<0.000000e+00> : vector<8xf32>
      %41 = vector.multi_reduction <add>, %40, %cst_22 [1] : vector<8x256xf32> to vector<8xf32>
      %42 = vector.shape_cast %41 : vector<8xf32> to vector<8x1xf32>
      %43 = arith.addf %28, %42 : vector<8x1xf32>
      %c0_23 = arith.constant 0 : index
      %c0_24 = arith.constant 0 : index
      %c0_25 = arith.constant 0 : index
      %44 = vector.load %arg8[%c0_23, %c0_24, %c0_25] : memref<2x8x1xf32, #tpu.memory_space<vmem>>, vector<1x8x1xf32>
      %45 = vector.shape_cast %44 : vector<1x8x1xf32> to vector<8x1xf32>
      %46 = arith.addf %45, %39 : vector<8x1xf32>
      %c0_26 = arith.constant 0 : index
      %c0_27 = arith.constant 0 : index
      %c0_28 = arith.constant 0 : index
      %47 = vector.load %arg8[%c0_26, %c0_27, %c0_28] : memref<2x8x1xf32, #tpu.memory_space<vmem>>, vector<1x8x1xf32>
      %48 = vector.shape_cast %47 : vector<1x8x1xf32> to vector<8x1xf32>
      %49 = vector.shape_cast %46 : vector<8x1xf32> to vector<1x8x1xf32>
      tpu.vector_store %arg8[%c0_26, %c0_27, %c0_28], %49 {strides = array<i32>} : memref<2x8x1xf32, #tpu.memory_space<vmem>>, vector<1x8x1xf32>,
      %c1_29 = arith.constant 1 : index
      %c0_30 = arith.constant 0 : index
      %c0_31 = arith.constant 0 : index
      %50 = vector.load %arg8[%c1_29, %c0_30, %c0_31] : memref<2x8x1xf32, #tpu.memory_space<vmem>>, vector<1x8x1xf32>
      %51 = vector.shape_cast %50 : vector<1x8x1xf32> to vector<8x1xf32>
      %52 = arith.addf %51, %43 : vector<8x1xf32>
      %c1_32 = arith.constant 1 : index
      %c0_33 = arith.constant 0 : index
      %c0_34 = arith.constant 0 : index
      %53 = vector.load %arg8[%c1_32, %c0_33, %c0_34] : memref<2x8x1xf32, #tpu.memory_space<vmem>>, vector<1x8x1xf32>
      %54 = vector.shape_cast %53 : vector<1x8x1xf32> to vector<8x1xf32>
      %55 = vector.shape_cast %52 : vector<8x1xf32> to vector<1x8x1xf32>
      tpu.vector_store %arg8[%c1_32, %c0_33, %c0_34], %55 {strides = array<i32>} : memref<2x8x1xf32, #tpu.memory_space<vmem>>, vector<1x8x1xf32>,
      %c0_i32_35 = arith.constant 0 : i32
      %56 = arith.cmpi eq, %arg1, %c0_i32_35 : i32
      %57 = arith.extui %56 : i1 to i32
      %c0_i32_36 = arith.constant 0 : i32
      %58 = arith.cmpi ne, %57, %c0_i32_36 : i32
      scf.if %58 {
        %c0_37 = arith.constant 0 : index
        %c0_38 = arith.constant 0 : index
        %c0_39 = arith.constant 0 : index
        %59 = vector.load %arg8[%c0_37, %c0_38, %c0_39] : memref<2x8x1xf32, #tpu.memory_space<vmem>>, vector<1x8x1xf32>
        %60 = vector.shape_cast %59 : vector<1x8x1xf32> to vector<8x1xf32>
        %cst_40 = arith.constant 0.001953125 : f32
        %61 = vector.broadcast %cst_40 : f32 to vector<8x1xf32>
        %62 = arith.mulf %60, %61 : vector<8x1xf32>
        %c1_41 = arith.constant 1 : index
        %c0_42 = arith.constant 0 : index
        %c0_43 = arith.constant 0 : index
        %63 = vector.load %arg8[%c1_41, %c0_42, %c0_43] : memref<2x8x1xf32, #tpu.memory_space<vmem>>, vector<1x8x1xf32>
        %64 = vector.shape_cast %63 : vector<1x8x1xf32> to vector<8x1xf32>
        %cst_44 = arith.constant 0.001953125 : f32
        %65 = vector.broadcast %cst_44 : f32 to vector<8x1xf32>
        %66 = arith.mulf %64, %65 : vector<8x1xf32>
        %67 = arith.mulf %62, %62 : vector<8x1xf32>
        %68 = arith.subf %66, %67 : vector<8x1xf32>
        %cst_45 = arith.constant 0.000000e+00 : f32
        %69 = vector.broadcast %cst_45 : f32 to vector<8x1xf32>
        %70 = arith.maximumf %68, %69 : vector<8x1xf32>
        %cst_46 = arith.constant 9.99999974E-6 : f32
        %71 = vector.broadcast %cst_46 : f32 to vector<8x1xf32>
        %72 = arith.addf %70, %71 : vector<8x1xf32>
        %73 = math.rsqrt %72 : vector<8x1xf32>
        %c0_47 = arith.constant 0 : index
        %c0_48 = arith.constant 0 : index
        %74 = vector.load %arg4[%c0_47, %c0_48] : memref<8x1xf32, #tpu.memory_space<vmem>>, vector<8x1xf32>
        %75 = arith.mulf %74, %73 : vector<8x1xf32>
        %c0_49 = arith.constant 0 : index
        %c0_50 = arith.constant 0 : index
        %c0_51 = arith.constant 0 : index
        %76 = vector.load %arg9[%c0_49, %c0_50, %c0_51] : memref<2x8x1xf32, #tpu.memory_space<vmem>>, vector<1x8x1xf32>
        %77 = vector.shape_cast %76 : vector<1x8x1xf32> to vector<8x1xf32>
        %78 = vector.shape_cast %75 : vector<8x1xf32> to vector<1x8x1xf32>
        tpu.vector_store %arg9[%c0_49, %c0_50, %c0_51], %78 {strides = array<i32>} : memref<2x8x1xf32, #tpu.memory_space<vmem>>, vector<1x8x1xf32>,
        %c0_52 = arith.constant 0 : index
        %c0_53 = arith.constant 0 : index
        %79 = vector.load %arg5[%c0_52, %c0_53] : memref<8x1xf32, #tpu.memory_space<vmem>>, vector<8x1xf32>
        %80 = arith.mulf %62, %75 : vector<8x1xf32>
        %81 = arith.subf %79, %80 : vector<8x1xf32>
        %c1_54 = arith.constant 1 : index
        %c0_55 = arith.constant 0 : index
        %c0_56 = arith.constant 0 : index
        %82 = vector.load %arg9[%c1_54, %c0_55, %c0_56] : memref<2x8x1xf32, #tpu.memory_space<vmem>>, vector<1x8x1xf32>
        %83 = vector.shape_cast %82 : vector<1x8x1xf32> to vector<8x1xf32>
        %84 = vector.shape_cast %81 : vector<8x1xf32> to vector<1x8x1xf32>
        tpu.vector_store %arg9[%c1_54, %c0_55, %c0_56], %84 {strides = array<i32>} : memref<2x8x1xf32, #tpu.memory_space<vmem>>, vector<1x8x1xf32>,
      } else {
      }
    } else {
    }
    %c1_i32 = arith.constant 1 : i32
    %5 = arith.cmpi eq, %arg0, %c1_i32 : i32
    %6 = arith.extui %5 : i1 to i32
    %c0_i32_1 = arith.constant 0 : i32
    %7 = arith.cmpi ne, %6, %c0_i32_1 : i32
    scf.if %7 {
      %8 = arith.index_cast %1 : i32 to index
      %c0 = arith.constant 0 : index
      %c0_2 = arith.constant 0 : index
      %9 = vector.load %arg7[%8, %c0, %c0_2] : memref<2x8x256xf32, #tpu.memory_space<vmem>>, vector<2x8x256xf32>
      %c0_3 = arith.constant 0 : index
      %c0_4 = arith.constant 0 : index
      %c0_5 = arith.constant 0 : index
      %10 = vector.load %arg9[%c0_3, %c0_4, %c0_5] : memref<2x8x1xf32, #tpu.memory_space<vmem>>, vector<1x8x1xf32>
      %11 = vector.shape_cast %10 : vector<1x8x1xf32> to vector<8x1xf32>
      %12 = vector.shape_cast %11 : vector<8x1xf32> to vector<1x8x1xf32>
      %13 = vector.broadcast %12 : vector<1x8x1xf32> to vector<2x8x256xf32>
      %14 = arith.mulf %9, %13 : vector<2x8x256xf32>
      %c1 = arith.constant 1 : index
      %c0_6 = arith.constant 0 : index
      %c0_7 = arith.constant 0 : index
      %15 = vector.load %arg9[%c1, %c0_6, %c0_7] : memref<2x8x1xf32, #tpu.memory_space<vmem>>, vector<1x8x1xf32>
      %16 = vector.shape_cast %15 : vector<1x8x1xf32> to vector<8x1xf32>
      %17 = vector.shape_cast %16 : vector<8x1xf32> to vector<1x8x1xf32>
      %18 = vector.broadcast %17 : vector<1x8x1xf32> to vector<2x8x256xf32>
      %19 = arith.addf %14, %18 : vector<2x8x256xf32>
      %cst = arith.constant 0.000000e+00 : f32
      %20 = vector.broadcast %cst : f32 to vector<2x8x256xf32>
      %21 = arith.maximumf %19, %20 : vector<2x8x256xf32>
      %c0_8 = arith.constant 0 : index
      %c0_9 = arith.constant 0 : index
      %c0_10 = arith.constant 0 : index
      %22 = vector.load %arg6[%c0_8, %c0_9, %c0_10] : memref<2x8x256xf32, #tpu.memory_space<vmem>>, vector<2x8x256xf32>
      tpu.vector_store %arg6[%c0_8, %c0_9, %c0_10], %21 {strides = array<i32>} : memref<2x8x256xf32, #tpu.memory_space<vmem>>, vector<2x8x256xf32>,
    } else {
    }
    return
  }
  func.func @transform_0(%arg0: i32, %arg1: i32) -> (i32, i32, i32) {
    %c1_i32 = arith.constant 1 : i32
    %0 = arith.subi %c1_i32, %arg0 : i32
    %1 = arith.muli %arg1, %0 : i32
    %c0_i32 = arith.constant 0 : i32
    %2 = arith.muli %c0_i32, %arg0 : i32
    %3 = arith.addi %1, %2 : i32
    %c0_i32_0 = arith.constant 0 : i32
    %c0_i32_1 = arith.constant 0 : i32
    %c0_i32_2 = arith.constant 0 : i32
    return %3, %c0_i32_0, %c0_i32_1 : i32, i32, i32
  }
  func.func @transform_1(%arg0: i32, %arg1: i32) -> (i32, i32) {
    %c0_i32 = arith.constant 0 : i32
    %c0_i32_0 = arith.constant 0 : i32
    %c0_i32_1 = arith.constant 0 : i32
    return %c0_i32, %c0_i32_0 : i32, i32
  }
  func.func @transform_2(%arg0: i32, %arg1: i32) -> (i32, i32) {
    %c0_i32 = arith.constant 0 : i32
    %c0_i32_0 = arith.constant 0 : i32
    %c0_i32_1 = arith.constant 0 : i32
    return %c0_i32, %c0_i32_0 : i32, i32
  }
  func.func @transform_3(%arg0: i32, %arg1: i32) -> (i32, i32) {
    %c0_i32 = arith.constant 0 : i32
    %c0_i32_0 = arith.constant 0 : i32
    %c0_i32_1 = arith.constant 0 : i32
    return %c0_i32, %c0_i32_0 : i32, i32
  }
  func.func @transform_4(%arg0: i32, %arg1: i32) -> (i32, i32, i32) {
    %0 = arith.muli %arg1, %arg0 : i32
    %c0_i32 = arith.constant 0 : i32
    %c0_i32_0 = arith.constant 0 : i32
    %c0_i32_1 = arith.constant 0 : i32
    return %0, %c0_i32, %c0_i32_0 : i32, i32, i32
  }
}

</mosaic_0001>

<bundles_post_ra>
// kernel: block_forward.1
= control target key start
LH: loop header
LB: loop body
LE: loop exit
PB: predicated region body
PF: predicated region fallthrough
CT: control target
= control target key end

     0   :  { %s721_s15 = smov 0   ;;  %s723_s16 = smov 0   ;;  %s813_s0 = inlined_call_operand.vmem [shape: bf16[2,36,256], index: 0, kind: input, shape index: {}]   ;;  %s814_s1 = inlined_call_operand.vmem [shape: bf16[8,36], index: 1, kind: input, shape index: {}]   ;;  %s815_s2 = inlined_call_operand.vmem [shape: f32[8,1], index: 2, kind: input, shape index: {}]   ;;  %s816_s3 = inlined_call_operand.vmem [shape: f32[8,1], index: 3, kind: input, shape index: {}]   ;;  %s817_s4 = inlined_call_operand.vmem [shape: f32[2,8,256], index: 4, kind: output, shape index: {}]  }
   0x1   :  { %s725_s17 = smov 0  }
   0x2 LB: > { %s26_s18 = sadd.s32 1, %s687_s16  ;;  %p593_p0 = scmp.ge.s32.totalorder %s691_s17, 1  ;;  %s691_s17 = sphi %s725_s17, %s14_s17   ;;  %s687_s16 = sphi %s723_s16, %s819_s16   ;;  %s683_s15 = sphi %s721_s15, %s818_s15  }
   0x3   : > { %p28_p1 = scmp.ge.s32.totalorder %s26_s18, 2  ;;  %p186_p2 = scmp.lt.s32.totalorder %s691_s17, 3 }
   0x5   : > { %s821_s18 = smov (%p28_p1, %s26_s18), 0  ;;  %p187_p3 = pnand %p593_p0, %p186_p2 }
   0x6   : > { %p594_p4 = scmp.ne.s32.totalorder (!%p187_p3), %s683_s15, 0 }
   0x7   : > { %190 = sbr.rel (%p187_p3) target bundleno = 570 (0x23a), region = 36 }
   0xe   : > { %242 = sbr.rel (%p594_p4) target bundleno = 429 (0x1ad), region = 40  ;;  %v650_v0 = vld [vmem:[%s813_s0 + $0x4] ss:$8 sps:$4 sm:$0xff] (!%p594_p4)   ;;  %v652_v1 = vld [vmem:[%s813_s0] ss:$8 sps:$4 sm:$0xff] (!%p594_p4)   ;;  %v693_v2 = vmov (!%p594_p4), 0  }
   0xf   : > { %324 = vmatprep.mubr.bf16.mxu0 (!%p594_p4), %v693_v2  ;;  %417 = vmatprep.mubr.bf16.mxu1 (!%p594_p4), %v693_v2  ;;  %v653_v3 = vld [vmem:[%s813_s0 + $0x2c] ss:$8 sps:$4 sm:$0xff] (!%p594_p4)   ;;  %v655_v4 = vld [vmem:[%s813_s0 + $0x28] ss:$8 sps:$4 sm:$0xff] (!%p594_p4)   ;;  %v659_v7 = vld [vmem:[%s813_s0 + $0x3c] ss:$8 sps:$4 sm:$0xff] (!%p594_p4)  }
  0x10   : > { %292 = vmatprep.subr.bf16.mxu0 (!%p594_p4), %v650_v0  ;;  %v656_v5 = vld [vmem:[%s813_s0 + $0x14] ss:$8 sps:$4 sm:$0xff] (!%p594_p4)   ;;  %v658_v6 = vld [vmem:[%s813_s0 + $0x10] ss:$8 sps:$4 sm:$0xff] (!%p594_p4)   ;;  %385 = vmatprep.subr.bf16.mxu1 (!%p594_p4), %v653_v3  ;;  %vm285_vm0 = vcmask (!%p594_p4), 1041408   ;;  %vm281_vm1 = vcmask (!%p594_p4), 293888  }
  0x11   : > { %293 = vmatpush1.bf16.msra.mxu0 (!%p594_p4), %v652_v1  ;;  %386 = vmatpush1.bf16.msra.mxu1 (!%p594_p4), %v655_v4  ;;  %v661_v8 = vld [vmem:[%s813_s0 + $0x38] ss:$8 sps:$4 sm:$0xff] (!%p594_p4)   ;;  %v607_v10 = vld [vmem:[%s813_s0 + $0x48] sm:$0x33] (!%p594_p4)  ;;  %vm247_vm2 = vcmask (!%p594_p4), 7168   ;;  %v694_v34 = vmov (!%p594_p4), 0.0  }
  0x12   : > { %294 = vmatprep.subr.bf16.mxu0 (!%p594_p4), %v656_v5  ;;  %v255_v9 = vld [vmem:[%s813_s0 + $0x20] sm:$0x33] (!%p594_p4)  ;;  %387 = vmatprep.subr.bf16.mxu1 (!%p594_p4), %v659_v7  ;;  %v613_v13 = vcombine.high (!%p594_p4), %v607_v10, %v607_v10  ;;  %v612_v14 = vcombine.low (!%p594_p4), %v607_v10, %v607_v10  ;;  %248 = vst.msk [vmem:[#allocation3] sm:$0xff] (!%p594_p4), %vm247_vm2, %v694_v34  ;;  %249 = vst.msk [vmem:[#allocation3 + $0x8] sm:$0xff] (!%p594_p4), %vm247_vm2, %v694_v34 }
  0x13   : > { %v600_v11 = vcombine.high (!%p594_p4), %v255_v9, %v255_v9  ;;  %v599_v12 = vcombine.low (!%p594_p4), %v255_v9, %v255_v9  ;;  %v250_v17 = vld [vmem:[%s814_s1] sm:$0xf] (!%p594_p4) }
  0x14   : > { %v380_v16 = vsel (!%p594_p4), %vm285_vm0, %v612_v14, 0  ;;  %v462_v53 = vld [vmem:[%s815_s2] sm:$0xff] (!%p594_p4) }
  0x15   : > { %295 = vmatpush1.bf16.msra.mxu0 %v658_v6  ;;  %v287_v15 = vsel %vm285_vm0, %v599_v12, 0  ;;  %388 = vmatpush1.bf16.msra.mxu1 %v661_v8  ;;  %v465_v56 = vld [vmem:[%s816_s3] sm:$0xff] }
  0x16   : > { %601 = vmatprep.subr.msk.bf16.mxu0 %vm285_vm0, %v600_v11  ;;  %614 = vmatprep.subr.msk.bf16.mxu1 %vm285_vm0, %v613_v13 }
  0x19   : > { %297 = vmatpush1.bf16.msra.mxu0 %v287_v15  ;;  %390 = vmatpush1.bf16.msra.mxu1 %v380_v16  ;;  %v442_v38 = vld [vmem:[#allocation3] sm:$0xff]  ;;  %v447_v41 = vld [vmem:[#allocation3 + $0x8] sm:$0xff] }
  0x1c   : > { %602 = vmatmul.mubr.msk.bf16.vlgmr.msra.gmra.mrb[0].mxu0 %vm281_vm1, %v250_v17  ;;  %615 = vmatmul.mubr.msk.bf16.vlgmr.msra.gmra.mrb[0].mxu1 %vm281_vm1, %v250_v17 }
  0xef   : > { %v326_v18 = vpop.f32.mrb[0].mxu0  ;;  %v419_v21 = vpop.f32.mrb[0].mxu1 }
  0xf0   : > { %336 = vst [vmem:[#allocation2] sm:$0xff] %v326_v18  ;;  %v328_v19 = vpop.f32.mrb[1].mxu0  ;;  %v342_v20 = vmul.f32 %v326_v18, %v326_v18  ;;  %616 = vst [vmem:[#allocation2 + $0x10] sm:$0xff] %v419_v21  ;;  %v421_v25 = vpop.f32.mrb[1].mxu1  ;;  %v436_v27 = vmul.f32 %v419_v21, %v419_v21 }
  0xf1   : > { %337 = vst [vmem:[#allocation2 + $0x8] sm:$0xff] %v328_v19  ;;  %v330_v22 = vpop.f32.mrb[2].mxu0  ;;  %v338_v23 = vadd.f32 %v328_v19, %v326_v18  ;;  %v343_v24 = vmul.f32 %v328_v19, %v328_v19  ;;  %617 = vst [vmem:[#allocation2 + $0x18] sm:$0xff] %v421_v25  ;;  %v423_v28 = vpop.f32.mrb[2].mxu1  ;;  %v432_v30 = vadd.f32 %v421_v25, %v419_v21 }
  0xf2   : > { %v331_v26 = vpop.f32.mrb[3].mxu0  ;;  %v437_v31 = vmul.f32 %v421_v25, %v421_v25  ;;  %v424_v32 = vpop.f32.mrb[3].mxu1 }
  0xf3   : > { %339 = vadd.xlane.f32.xlu0 %v338_v23  ;;  %v344_v29 = vadd.f32 %v343_v24, %v342_v20 }
  0xf4   : > { %v438_v33 = vadd.f32 %v437_v31, %v436_v27 }
  0xf5   : > { %345 = vadd.xlane.f32.xlu1 %v344_v29 }
  0xf7   : > { %433 = vadd.xlane.f32.xlu0 %v432_v30 }
  0xf9   : > { %439 = vadd.xlane.f32.xlu1 %v438_v33 }
 0x180   : > { %v340_v35 = vpop.xlane.xlu0 %339 }
 0x182   : > { %v346_v36 = vpop.xlane.xlu1 %345 }
 0x184   : > { %v434_v37 = vpop.xlane.xlu0 %433 }
 0x185   : > { %v435_v39 = vadd.f32 %v434_v37, %v340_v35 }
 0x186   : > { %v440_v40 = vpop.xlane.xlu1 %439 }
 0x187   : > { %v443_v42 = vadd.f32 %v442_v38, %v435_v39  ;;  %v441_v43 = vadd.f32 %v440_v40, %v346_v36 }
 0x189   : > { %445 = vst.msk [vmem:[#allocation3] sm:$0xff] %vm247_vm2, %v443_v42  ;;  %v448_v44 = vadd.f32 %v447_v41, %v441_v43 }
 0x18b   : > { %449 = vst.msk [vmem:[#allocation3 + $0x8] sm:$0xff] %vm247_vm2, %v448_v44 }
 0x190   : > { %v453_v45 = vld [vmem:[#allocation3] sm:$0xff] }
 0x191   : > { %v454_v46 = vmul.f32 0.001953125, %v453_v45 }
 0x192   : > { %v455_v47 = vld [vmem:[#allocation3 + $0x8] sm:$0xff] }
 0x193   : > { %v457_v48 = vmul.f32 %v454_v46, %v454_v46  ;;  %v456_v49 = vmul.f32 0.001953125, %v455_v47 }
 0x195   : > { %v458_v50 = vsub.f32 %v456_v49, %v457_v48 }
 0x197   : > { %v459_v51 = vmax.f32 %v458_v50, 0.0 }
 0x199   : > { %v460_v52 = vadd.f32 1e-05, %v459_v51 }
 0x19b   : > { %666 = vrsqrt.f32 %v460_v52 }
 0x1a5   : > { %v667_v54 = vpop.eup %666 }
 0x1a6   : > { %v463_v55 = vmul.f32 %v667_v54, %v462_v53 }
 0x1a8   : > { %464 = vst.msk [vmem:[#allocation4] sm:$0xff] %vm247_vm2, %v463_v55  ;;  %v466_v57 = vmul.f32 %v463_v55, %v454_v46 }
 0x1aa   : > { %v467_v58 = vsub.f32 %v465_v56, %v466_v57 }
 0x1ac   : > { %469 = vst.msk [vmem:[#allocation4 + $0x8] sm:$0xff] %vm247_vm2, %v467_v58 }
 0x1ad PF: > { %p618_p5 = scmp.ne.s32.totalorder %s683_s15, 1 }
 0x1ae   : > { %v695_v60 = vmov (!%p618_p5), 0   ;;  %v477_v62 = vld [vmem:[#allocation2] sm:$0xff] (!%p618_p5)  ;;  %v478_v0 = vld [vmem:[#allocation2 + $0x8] sm:$0xff] (!%p618_p5)  ;;  %v479_v1 = vld [vmem:[#allocation2 + $0x10] sm:$0xff] (!%p618_p5) }
 0x1af   : > { %473 = sbr.rel (%p618_p5) target bundleno = 570 (0x23a), region = 52  ;;  %v481_v59 = vld [vmem:[#allocation4] sm:$0xff] (!%p618_p5)  ;;  %668 = vset.pattern.permute.xlu0 (!%p618_p5), %v695_v60  ;;  %v480_v2 = vld [vmem:[#allocation2 + $0x18] sm:$0xff] (!%p618_p5) }
 0x1b0   : > { %484 = vperm.xlu0 (!%p618_p5), %668, %v481_v59  }
 0x1b3   : > { %v492_v61 = vld [vmem:[#allocation4 + $0x8] sm:$0xff] (!%p618_p5) }
 0x1b4   : > { %495 = vperm.xlu0 (!%p618_p5), %668, %v492_v61  }
 0x22f   : > { %v485_v63 = vpop.permute.xlu0 %484 }
 0x230   : > { %v487_v3 = vmul.f32 %v485_v63, %v477_v62  ;;  %v488_v4 = vmul.f32 %v485_v63, %v478_v0  ;;  %v489_v5 = vmul.f32 %v485_v63, %v479_v1  ;;  %v490_v6 = vmul.f32 %v485_v63, %v480_v2 }
 0x233   : > { %v496_v7 = vpop.permute.xlu0 %495 }
 0x234   : > { %v498_v8 = vadd.f32 %v496_v7, %v487_v3  ;;  %v499_v9 = vadd.f32 %v496_v7, %v488_v4  ;;  %v500_v10 = vadd.f32 %v496_v7, %v489_v5  ;;  %v501_v11 = vadd.f32 %v496_v7, %v490_v6 }
 0x236   : > { %v502_v12 = vmax.f32 %v498_v8, 0.0  ;;  %v503_v13 = vmax.f32 %v499_v9, 0.0  ;;  %v504_v14 = vmax.f32 %v500_v10, 0.0  ;;  %v505_v15 = vmax.f32 %v501_v11, 0.0 }
 0x238   : > { %506 = vst [vmem:[%s817_s4] sm:$0xff] %v502_v12  ;;  %507 = vst [vmem:[%s817_s4 + $0x8] sm:$0xff] %v503_v13 }
 0x239   : > { %508 = vst [vmem:[%s817_s4 + $0x10] sm:$0xff] %v504_v14  ;;  %509 = vst [vmem:[%s817_s4 + $0x18] sm:$0xff] %v505_v15 }
 0x23a PF: > { %s14_s17 = sadd.s32 1, %s691_s17   ;;  %s818_s15 = smov %s687_s16 }
 0x23b   : > { %p11_p6 = scmp.ge.s32.totalorder %s14_s17, 4   ;;  %s819_s16 = smov %s821_s18 }
 0x23d   :  { %13 = sbr.rel (!%p11_p6) target bundleno = 2 (0x2), region = 89 }

</bundles_post_ra>
